<compile_context>
chip_gen: v5e
topology: v5e:2x2
jax: 0.10.0
libtpu: 0.0.40
codegen_flags: <defaults>
</compile_context>

<pallas_src>
import numpy as np
import jax
import jax.numpy as jnp
from jax.experimental import pallas as pl
from jax.experimental.pallas import tpu as pltpu


# ----------------------------------------------------------------------------
# host-side helpers (pure python / numpy, compile-time constants)
# ----------------------------------------------------------------------------
def _adaptive_pool_bounds(in_size, out_size):
    """Window bounds used by torch.nn.AdaptiveAvgPool2d along one axis."""
    return [((i * in_size) // out_size, -((-(i + 1) * in_size) // out_size))
            for i in range(out_size)]


def _bilinear_weights(out_size, in_size):
    """(out_size, in_size) matrix matching F.interpolate(mode='bilinear',
    align_corners=False) along one axis."""
    A = np.zeros((out_size, in_size), dtype=np.float32)
    scale = in_size / out_size
    for o in range(out_size):
        src = max((o + 0.5) * scale - 0.5, 0.0)
        i0 = min(int(np.floor(src)), in_size - 1)
        i1 = min(i0 + 1, in_size - 1)
        l1 = src - i0
        A[o, i0] += 1.0 - l1
        A[o, i1] += l1
    return A


def _pool_matrix(H, W, p):
    """(H*W, p*p) so that x(C,H*W) @ P == AdaptiveAvgPool2d(p)(x), flattened."""
    hb = _adaptive_pool_bounds(H, p)
    wb = _adaptive_pool_bounds(W, p)
    P = np.zeros((H * W, p * p), dtype=np.float32)
    for i, (hs, he) in enumerate(hb):
        for j, (ws, we) in enumerate(wb):
            inv = 1.0 / float((he - hs) * (we - ws))
            for h in range(hs, he):
                P[h * W + ws:h * W + we, i * p + j] = inv
    return P


def _upsample_matrix(H, W, p):
    """(p*p, H*W) so that y(Cout,p*p) @ A == bilinear upsample of y to (H,W)."""
    Ah = _bilinear_weights(H, p)                      # (H, p)
    Aw = _bilinear_weights(W, p)                      # (W, p)
    A = np.einsum('hi,wj->ijhw', Ah, Aw).astype(np.float32)
    return np.ascontiguousarray(A.reshape(p * p, H * W))


def _build_packed_maps(H, W, pool_sizes, cout):
    """Packed + zero-padded pooling / upsample / branch-mask matrices."""
    S = sum(p * p for p in pool_sizes)
    SP = ((S + 63) // 64) * 64                        # pad pyramid axis
    HW = H * W
    Ctot = cout * len(pool_sizes)
    P_all = np.zeros((HW, SP), np.float32)
    Aup_all = np.zeros((SP, HW), np.float32)
    mask = np.zeros((Ctot, SP), np.float32)
    off = 0
    for b, p in enumerate(pool_sizes):
        pp = p * p
        P_all[:, off:off + pp] = _pool_matrix(H, W, p)
        Aup_all[off:off + pp, :] = _upsample_matrix(H, W, p)
        mask[b * cout:(b + 1) * cout, off:off + pp] = 1.0
        off += pp
    return P_all, Aup_all, mask


# ----------------------------------------------------------------------------
# Pallas kernel: all branches fused, grid = (batch, channel_tile)
# ----------------------------------------------------------------------------
def _spp_kernel(x_ref, p_ref, wc_ref, shift_ref, mask_ref, aup_ref, o_ref):
    f32 = jnp.float32
    x = x_ref[0]                                                    # (C, HW)
    # Adaptive average pool, all branches at once: (C,HW)@(HW,SP) -> (C,SP).
    pooled = jnp.dot(x, p_ref[...], preferred_element_type=f32)
    # 1x1 conv with the BN scale folded in: (TCO,C)@(C,SP) -> (TCO,SP).
    y = jnp.dot(wc_ref[...].astype(f32), pooled, preferred_element_type=f32)
    # BN shift + ReLU on the whole tile, then zero off-branch columns with the
    # static 0/1 block-diagonal mask (padded columns are also zeroed).
    y = jnp.maximum(y + shift_ref[...].astype(f32), 0.0) * mask_ref[...].astype(f32)
    # Bilinear upsample (align_corners=False): (TCO,SP)@(SP,HW) -> (TCO,HW).
    up = jnp.dot(y, aup_ref[...].astype(f32), preferred_element_type=f32)
    o_ref[0] = up.astype(o_ref.dtype)                               # dense store


def _pick_channel_tile(Ctot):
    """Largest convenient output-channel tile (multiple of 8) dividing Ctot."""
    for cand in (512, 256, 128, 64, 32, 16, 8):
        if Ctot > cand and Ctot % cand == 0:
            return cand
    return Ctot


def _vmem_limit_bytes(C, TCO, HW, SP, itemsize):
    per_step = (C * HW + TCO * HW) * itemsize            # x block + out block
    consts = (HW * SP + TCO * C + TCO + TCO * SP + SP * HW) * itemsize
    interm = (C * SP + TCO * SP + TCO * HW) * 4          # f32 intermediates
    need = 2 * (per_step + consts) + interm + (4 << 20)
    cap = 64 << 20                                       # safe on every gen
    try:                                                 # per-generation cap
        cap = int(pltpu.get_tpu_info().vmem_capacity_bytes) - (8 << 20)
    except Exception:
        pass
    return int(min(max(need, 16 << 20), cap))


def _spp_forward(x, P_all, wc_all, shift_all, mask_all, Aup_all):
    B, C, H, W = x.shape
    HW = H * W
    Ctot = wc_all.shape[0]
    SP = P_all.shape[1]
    x_flat = x.reshape(B, C, HW)                         # lane-dense layout

    TCO = _pick_channel_tile(Ctot)
    n_ct = Ctot // TCO

    # NOTE: in_specs order == operand order == kernel signature order.
    out_flat = pl.pallas_call(
        _spp_kernel,
        out_shape=jax.ShapeDtypeStruct((B, Ctot, HW), x.dtype),
        grid=(B, n_ct),
        in_specs=[
            pl.BlockSpec((1, C, HW), lambda b, j: (b, 0, 0)),   # x (per batch)
            pl.BlockSpec((HW, SP), lambda b, j: (0, 0)),        # packed pool mat
            pl.BlockSpec((TCO, C), lambda b, j: (j, 0)),        # folded conv w
            pl.BlockSpec((TCO, 1), lambda b, j: (j, 0)),        # BN shift
            pl.BlockSpec((TCO, SP), lambda b, j: (j, 0)),       # branch mask
            pl.BlockSpec((SP, HW), lambda b, j: (0, 0)),        # packed upsample
        ],
        out_specs=pl.BlockSpec((1, TCO, HW), lambda b, j: (b, j, 0)),
        compiler_params=pltpu.CompilerParams(
            dimension_semantics=("parallel", "parallel"),
            vmem_limit_bytes=_vmem_limit_bytes(
                C, TCO, HW, SP, jnp.dtype(x.dtype).itemsize)),
    )(x_flat, P_all, wc_all, shift_all, mask_all, Aup_all)
    return out_flat.reshape(B, Ctot, H, W)


# ----------------------------------------------------------------------------
# module wrapper (parameter init + glue)
# ----------------------------------------------------------------------------
class SpatialPyramidPoolingPallas:
    """Pallas TPU port of SpatialPyramidPooling (BatchNorm in inference mode)."""

    def __init__(self, in_channels, pool_sizes=(1, 2, 3, 6), key=None, eps=1e-5):
        if key is None:
            key = jax.random.PRNGKey(0)
        assert in_channels % len(pool_sizes) == 0
        self.pool_sizes = tuple(pool_sizes)
        self.in_channels = in_channels
        self.branch_channels = in_channels // len(pool_sizes)
        self.out_channels = in_channels
        cout = self.branch_channels

        self.params = []                      # per-branch (w, scale, shift)
        wc_list, shift_list = [], []
        for _ in self.pool_sizes:
            key, kw, kg, kb, km, kv = jax.random.split(key, 6)
            w = jax.random.normal(kw, (cout, in_channels), jnp.float32)
            w = w * (1.0 / np.sqrt(in_channels))          # fan-in style init
            gamma = 1.0 + 0.1 * jax.random.normal(kg, (cout, 1), jnp.float32)
            beta = 0.1 * jax.random.normal(kb, (cout, 1), jnp.float32)
            r_mean = 0.1 * jax.random.normal(km, (cout, 1), jnp.float32)
            r_var = 1.0 + 0.1 * jnp.abs(jax.random.normal(kv, (cout, 1),
                                                          jnp.float32))
            scale = gamma / jnp.sqrt(r_var + eps)         # fold eval-mode BN
            shift = beta - r_mean * scale
            self.params.append((w, scale, shift))
            wc_list.append(w * scale)                     # BN scale folded in
            shift_list.append(shift)
        self.wc_all = jnp.concatenate(wc_list, axis=0)        # (Ctot, C)
        self.shift_all = jnp.concatenate(shift_list, axis=0)  # (Ctot, 1)
        self._cache = {}                                      # (H,W,dtype) -> consts

    def __call__(self, x):
        B, C, H, W = x.shape
        assert C == self.in_channels
        for p in self.pool_sizes:
            assert 1 <= p <= H and p <= W, "pool_size must not exceed H/W"
        dt = jnp.dtype(x.dtype)
        ck = (H, W, str(dt))
        if ck not in self._cache:
            P, A, M = _build_packed_maps(H, W, self.pool_sizes,
                                         self.branch_channels)
            self._cache[ck] = (jnp.asarray(P, dt), jnp.asarray(A, dt),
                               jnp.asarray(M, dt),
                               self.wc_all.astype(dt), self.shift_all.astype(dt))
        P_all, Aup_all, mask_all, wc, shift = self._cache[ck]
        return _spp_forward(x, P_all, wc, shift, mask_all, Aup_all)


# ----------------------------------------------------------------------------
# pure-JAX reference (same math, no Pallas) used as a sanity check
# ----------------------------------------------------------------------------
def _spp_reference(x, module):
    B, C, H, W = x.shape
    outs = []
    for p, (w, scale, shift) in zip(module.pool_sizes, module.params):
        hb = _adaptive_pool_bounds(H, p)
        wb = _adaptive_pool_bounds(W, p)
        pooled = jnp.stack(
            [jnp.stack([x[:, :, hs:he, ws:we].mean(axis=(2, 3)) for ws, we in wb],
                       axis=-1) for hs, he in hb],
            axis=-2)                                                  # (B,C,p,p)
        y = jnp.einsum('oc,bcij->boij', w, pooled, precision='highest')
        y = y * scale.reshape(1, -1, 1, 1) + shift.reshape(1, -1, 1, 1)
        y = jnp.maximum(y, 0.0)
        ah = jnp.asarray(_bilinear_weights(H, p))
        aw = jnp.asarray(_bilinear_weights(W, p))
        up = jnp.einsum('hp,bopq,wq->bohw', ah, y, aw, precision='highest')
        outs.append(up)
    return jnp.concatenate(outs, axis=1)


if __name__ == "__main__":
    key = jax.random.PRNGKey(0)
    k_x, k_p = jax.random.split(key)

    B, C, H, W = 2, 4, 16, 16
    x = jax.random.normal(k_x, (B, C, H, W), jnp.float32)

    spp = SpatialPyramidPoolingPallas(C, pool_sizes=[1, 2, 3, 6], key=k_p)
    out = jax.block_until_ready(spp(x))
    assert out.shape == (B, spp.out_channels, H, W), out.shape

    ref = _spp_reference(x, spp)
    # Tolerance covers the MXU's bf16-pass handling of f32 matmuls at default
    # precision vs the 'highest'-precision XLA reference.
    np.testing.assert_allclose(np.asarray(out), np.asarray(ref),
                               rtol=2e-2, atol=2e-2)
    print("KERNEL_OK")
</pallas_src>

<mosaic_0001>
module attributes {stable_mosaic.version = 11 : i64} {
  func.func @_spp_kernel(%arg0: i32, %arg1: i32, %arg2: memref<1x4x256xf32, #tpu.memory_space<vmem>>, %arg3: memref<256x64xf32, #tpu.memory_space<vmem>>, %arg4: memref<4x4xf32, #tpu.memory_space<vmem>>, %arg5: memref<4x1xf32, #tpu.memory_space<vmem>>, %arg6: memref<4x64xf32, #tpu.memory_space<vmem>>, %arg7: memref<64x256xf32, #tpu.memory_space<vmem>>, %arg8: memref<1x4x256xf32, #tpu.memory_space<vmem>>) attributes {dimension_semantics = [#tpu.dimension_semantics<parallel>, #tpu.dimension_semantics<parallel>], iteration_bounds = array<i64: 2, 1>, scalar_prefetch = 0 : i64, scratch_operands = 0 : i64, tpu.core_type = #tpu.core_type<tc>, window_params = [{transform_indices = @transform_0, window_bounds = array<i64: 1, 4, 256>}, {pipeline_mode = #tpu.pipeline_mode<synchronous>, transform_indices = @transform_1, window_bounds = array<i64: 256, 64>}, {transform_indices = @transform_2, window_bounds = array<i64: 4, 4>}, {transform_indices = @transform_3, window_bounds = array<i64: 4, 1>}, {transform_indices = @transform_4, window_bounds = array<i64: 4, 64>}, {pipeline_mode = #tpu.pipeline_mode<synchronous>, transform_indices = @transform_5, window_bounds = array<i64: 64, 256>}, {transform_indices = @transform_6, window_bounds = array<i64: 1, 4, 256>}]} {
    %c0 = arith.constant 0 : index
    %c0_0 = arith.constant 0 : index
    %c0_1 = arith.constant 0 : index
    %0 = vector.load %arg2[%c0, %c0_0, %c0_1] : memref<1x4x256xf32, #tpu.memory_space<vmem>>, vector<1x4x256xf32>
    %1 = vector.shape_cast %0 : vector<1x4x256xf32> to vector<4x256xf32>
    %c0_2 = arith.constant 0 : index
    %c0_3 = arith.constant 0 : index
    %2 = vector.load %arg3[%c0_2, %c0_3] : memref<256x64xf32, #tpu.memory_space<vmem>>, vector<256x64xf32>
    %cst = arith.constant dense<0.000000e+00> : vector<4x64xf32>
    %3 = tpu.matmul %1, %2, %cst {dimension_numbers = #tpu.dot_dimension_numbers<[1], [0], [0], [1], [0, 0, 1, 1], [], []>} : vector<4x256xf32>, vector<256x64xf32>, vector<4x64xf32> -> vector<4x64xf32>
    %c0_4 = arith.constant 0 : index
    %c0_5 = arith.constant 0 : index
    %4 = vector.load %arg4[%c0_4, %c0_5] : memref<4x4xf32, #tpu.memory_space<vmem>>, vector<4x4xf32>
    %cst_6 = arith.constant dense<0.000000e+00> : vector<4x64xf32>
    %5 = tpu.matmul %4, %3, %cst_6 {dimension_numbers = #tpu.dot_dimension_numbers<[1], [0], [0], [1], [0, 0, 1, 1], [], []>} : vector<4x4xf32>, vector<4x64xf32>, vector<4x64xf32> -> vector<4x64xf32>
    %c0_7 = arith.constant 0 : index
    %c0_8 = arith.constant 0 : index
    %6 = vector.load %arg5[%c0_7, %c0_8] : memref<4x1xf32, #tpu.memory_space<vmem>>, vector<4x1xf32>
    %7 = vector.broadcast %6 : vector<4x1xf32> to vector<4x64xf32>
    %8 = arith.addf %5, %7 : vector<4x64xf32>
    %cst_9 = arith.constant 0.000000e+00 : f32
    %9 = vector.broadcast %cst_9 : f32 to vector<4x64xf32>
    %10 = arith.maximumf %8, %9 : vector<4x64xf32>
    %c0_10 = arith.constant 0 : index
    %c0_11 = arith.constant 0 : index
    %11 = vector.load %arg6[%c0_10, %c0_11] : memref<4x64xf32, #tpu.memory_space<vmem>>, vector<4x64xf32>
    %12 = arith.mulf %10, %11 : vector<4x64xf32>
    %c0_12 = arith.constant 0 : index
    %c0_13 = arith.constant 0 : index
    %13 = vector.load %arg7[%c0_12, %c0_13] : memref<64x256xf32, #tpu.memory_space<vmem>>, vector<64x256xf32>
    %cst_14 = arith.constant dense<0.000000e+00> : vector<4x256xf32>
    %14 = tpu.matmul %12, %13, %cst_14 {dimension_numbers = #tpu.dot_dimension_numbers<[1], [0], [0], [1], [0, 0, 1, 1], [], []>} : vector<4x64xf32>, vector<64x256xf32>, vector<4x256xf32> -> vector<4x256xf32>
    %c0_15 = arith.constant 0 : index
    %c0_16 = arith.constant 0 : index
    %c0_17 = arith.constant 0 : index
    %15 = vector.load %arg8[%c0_15, %c0_16, %c0_17] : memref<1x4x256xf32, #tpu.memory_space<vmem>>, vector<1x4x256xf32>
    %16 = vector.shape_cast %15 : vector<1x4x256xf32> to vector<4x256xf32>
    %17 = vector.shape_cast %14 : vector<4x256xf32> to vector<1x4x256xf32>
    tpu.vector_store %arg8[%c0_15, %c0_16, %c0_17], %17 {strides = array<i32>} : memref<1x4x256xf32, #tpu.memory_space<vmem>>, vector<1x4x256xf32>,
    return
  }
  func.func @transform_0(%arg0: i32, %arg1: i32) -> (i32, i32, i32) {
    %c0_i32 = arith.constant 0 : i32
    %c0_i32_0 = arith.constant 0 : i32
    %c0_i32_1 = arith.constant 0 : i32
    return %arg0, %c0_i32, %c0_i32_0 : i32, i32, i32
  }
  func.func @transform_1(%arg0: i32, %arg1: i32) -> (i32, i32) {
    %c0_i32 = arith.constant 0 : i32
    %c0_i32_0 = arith.constant 0 : i32
    %c0_i32_1 = arith.constant 0 : i32
    return %c0_i32, %c0_i32_0 : i32, i32
  }
  func.func @transform_2(%arg0: i32, %arg1: i32) -> (i32, i32) {
    %c0_i32 = arith.constant 0 : i32
    %c0_i32_0 = arith.constant 0 : i32
    return %arg1, %c0_i32 : i32, i32
  }
  func.func @transform_3(%arg0: i32, %arg1: i32) -> (i32, i32) {
    %c0_i32 = arith.constant 0 : i32
    %c0_i32_0 = arith.constant 0 : i32
    return %arg1, %c0_i32 : i32, i32
  }
  func.func @transform_4(%arg0: i32, %arg1: i32) -> (i32, i32) {
    %c0_i32 = arith.constant 0 : i32
    %c0_i32_0 = arith.constant 0 : i32
    return %arg1, %c0_i32 : i32, i32
  }
  func.func @transform_5(%arg0: i32, %arg1: i32) -> (i32, i32) {
    %c0_i32 = arith.constant 0 : i32
    %c0_i32_0 = arith.constant 0 : i32
    %c0_i32_1 = arith.constant 0 : i32
    return %c0_i32, %c0_i32_0 : i32, i32
  }
  func.func @transform_6(%arg0: i32, %arg1: i32) -> (i32, i32, i32) {
    %c0_i32 = arith.constant 0 : i32
    %c0_i32_0 = arith.constant 0 : i32
    return %arg0, %arg1, %c0_i32 : i32, i32, i32
  }
}

</mosaic_0001>

<bundles_post_ra>
// kernel: tpu_custom_call.1
= control target key start
LH: loop header
LB: loop body
LE: loop exit
PB: predicated region body
PF: predicated region fallthrough
CT: control target
= control target key end

     0   :  { %11 = vsyncpa [#allocation3], 0  ;;  %s1079_s0 = inlined_call_operand.vmem [shape: f32[2,4,256], index: 0, kind: input, shape index: {}]   ;;  %s1080_s1 = inlined_call_operand.vmem [shape: f32[256,64], index: 1, kind: input, shape index: {}]   ;;  %s1081_s2 = inlined_call_operand.vmem [shape: f32[4,4], index: 2, kind: input, shape index: {}]   ;;  %s1082_s3 = inlined_call_operand.vmem [shape: f32[4,1], index: 3, kind: input, shape index: {}]   ;;  %s1083_s4 = inlined_call_operand.vmem [shape: f32[4,64], index: 4, kind: input, shape index: {}]   ;;  %s1084_s5 = inlined_call_operand.vmem [shape: f32[64,256], index: 5, kind: input, shape index: {}]   ;;  %s1085_s6 = inlined_call_operand.hbm [shape: f32[2,4,256], index: 6, kind: output, shape index: {}]  }
   0x1   :  { %13 = vsyncpa [#allocation3 + $0x1], 0  ;;  %s827_s21 = smov 0   ;;  %s829_s22 = smov 0  }
   0x2   :  { %s831_s23 = smov 0   ;;  %s833_s24 = smov 0  }
   0x3   :  { %s835_s25 = smov 0   ;;  %s837_s26 = smov 0  }
   0x4 LB: > { %s632_s27 = sadd.s32 4294967295, %s789_s26   ;;  %s633_s28 = sadd.s32 4294967294, %s789_s26   ;;  %s789_s26 = sphi %s837_s26, %s19_s26   ;;  %s785_s25 = sphi %s835_s25, %s1092_s25   ;;  %s781_s24 = sphi %s833_s24, %s1091_s24   ;;  %s777_s23 = sphi %s831_s23, %s1090_s23   ;;  %s773_s22 = sphi %s829_s22, %s1089_s22   ;;  %s769_s21 = sphi %s827_s21, %s1088_s21  }
   0x5   : > { %s31_s29 = sadd.s32 1, %s785_s25  ;;  %s186_s30 = sadd.s32 1, %s777_s23 }
   0x6   : > { %p33_p0 = scmp.ge.s32.totalorder %s31_s29, 2  ;;  %p196_p1 = scmp.ne.s32.totalorder %s777_s23, %s773_s22 }
   0x7   : > { %p197_p2 = scmp.eq.s32.totalorder %s632_s27, 1  ;;  %p202_p3 = scmp.ne.s32.totalorder %s773_s22, %s769_s21 }
   0x8   : > { %s1094_s29 = smov (%p33_p0, %s31_s29), 0  ;;  %p203_p5 = scmp.eq.s32.totalorder %s633_s28, 1 }
   0x9   : > { %p867_p4 = por %p197_p2, %p196_p1  ;;  %s181_s8 = ssub.s32 %s785_s25, %s1094_s29 }
   0xa   : > { %p639_p6 = scmp.ge.s32.totalorder %s789_s26, 1  ;;  %p184_p7 = scmp.eq.s32.totalorder %s181_s8, 0 }
   0xb   : > { %p874_p8 = por %p203_p5, %p202_p3  ;;  %p256_p9 = scmp.lt.s32.totalorder %s789_s26, 3 }
   0xc   : > { %s880_s10 = scalar_select %p184_p7, %s777_s23, %s186_s30  }
   0xd   : > { %p257_p10 = pnand %p639_p6, %p256_p9 }
   0xe   : > { %p298_p11 = scmp.lt.s32.totalorder (!%p257_p10), %s781_s24, 1  ;;  %s295_s20 = sand.u32 (!%p257_p10), 1, %s773_s22  }
   0xf   : > { %260 = sbr.rel (%p257_p10) target bundleno = 458 (0x1ca), region = 44  ;;  %s640_s28 = sshll.u32 (!%p257_p10), %s295_s20, 3 }
  0x10   : > { %s653_s8 = sshll.u32 (!%p257_p10), %s781_s24, 3  ;;  %s297_s12 = scalar_lea.vmem (!%p257_p10), [#allocation2], %s640_s28 }
  0x11   : > { %s512_s11 = scalar_lea.hbm (!%p257_p10), %s1085_s6, %s653_s8  ;;  %s514_s13 = sshll.u32 (!%p257_p10), %s297_s12, 4  ;;  %s515_s13 = int_to_ptr.vmem [resolvable:$true] %s514_s13 }
  0x12   : > { %s516_s15 = sshll.u32 (!%p257_p10), %s512_s11, 4  ;;  %s499_s16 = scalar_lea.sflag (!%p257_p10), [#allocation3], %s295_s20  ;;  %s517_s15 = int_to_ptr.hbm [resolvable:$true] %s516_s15 }
  0x13   : > { %s731_s19 = scalar_lea.hbm (!%p257_p10), %s1085_s6, 16 }
  0x14   : > { %v331_v0 = vld [vmem:[%s1080_s1 + $0x78] sm:$0xff]  ;;  %v330_v2 = vld [vmem:[%s1080_s1 + $0x70] sm:$0xff]  ;;  %v329_v4 = vld [vmem:[%s1080_s1 + $0x68] sm:$0xff]  ;;  %s299_s30 = scalar_select %p298_p11, %s781_s24, 1  ;;  %v791_v37 = vmov 0   ;;  %vm405_vm0 = vcmask 1043456  }
  0x15   : > { %v347_v1 = vld [vmem:[%s1080_s1 + $0xf8] sm:$0xff]  ;;  %354 = vmatpush.msra.mxu0 %v331_v0  ;;  %v346_v3 = vld [vmem:[%s1080_s1 + $0xf0] sm:$0xff]  ;;  %v345_v5 = vld [vmem:[%s1080_s1 + $0xe8] sm:$0xff]  ;;  %710 = vset.pattern.permute.xlu0 %v791_v37  ;;  %vm401_vm1 = vcmask 31744   ;;  %vm448_vm2 = vcmask 523264  }
  0x16   : > { %374 = vmatpush.msra.mxu1 %v347_v1  ;;  %v328_v6 = vld [vmem:[%s1080_s1 + $0x60] sm:$0xff]  ;;  %s652_s14 = sshll.u32 %s299_s30, 3  ;;  %v327_v8 = vld [vmem:[%s1080_s1 + $0x58] sm:$0xff]  ;;  %v326_v10 = vld [vmem:[%s1080_s1 + $0x50] sm:$0xff] }
  0x17   : > { %355 = vmatpush.msra.mxu0 %v330_v2  ;;  %v344_v7 = vld [vmem:[%s1080_s1 + $0xe0] sm:$0xff]  ;;  %v343_v9 = vld [vmem:[%s1080_s1 + $0xd8] sm:$0xff]  ;;  %s302_s27 = scalar_lea.vmem %s1079_s0, %s652_s14  ;;  %v342_v11 = vld [vmem:[%s1080_s1 + $0xd0] sm:$0xff]  ;;  %s725_s14 = sshra.s32 %s517_s15, 4  ;;  %s726_s14 = int_to_ptr.hbm [resolvable:$true] %s725_s14 }
  0x18   : > { %375 = vmatpush.msra.mxu1 %v346_v3  ;;  %v325_v12 = vld [vmem:[%s1080_s1 + $0x48] sm:$0xff]  ;;  %v315_v14 = vld [vmem:[%s302_s27] sm:$0xff]  ;;  %v323_v17 = vld [vmem:[%s1080_s1 + $0x38] sm:$0xff]  ;;  %s727_s24 = scalar_lea.hbm %s726_s14, 8  ;;  %p732_p1 = scmp.lt.s32.totalorder %s726_s14, %s1085_s6 }
  0x19   : > { %356 = vmatpush.msra.mxu0 %v329_v4  ;;  %v341_v13 = vld [vmem:[%s1080_s1 + $0xc8] sm:$0xff]  ;;  %349 = vst [vmem:[#allocation1] ss:$2 sm:$0xff] %v315_v14  ;;  %v324_v15 = vld [vmem:[%s1080_s1 + $0x40] sm:$0xff]  ;;  %v339_v18 = vld [vmem:[%s1080_s1 + $0xb8] sm:$0xff]  ;;  %p728_p12 = scmp.ne.s32.totalorder %s726_s14, %s727_s24  ;;  %p733_p2 = scmp.lt.s32.totalorder %s731_s19, %s727_s24 }
  0x1a   : > { %376 = vmatpush.msra.mxu1 %v345_v5  ;;  %v340_v16 = vld [vmem:[%s1080_s1 + $0xc0] sm:$0xff]  ;;  %v322_v19 = vld [vmem:[%s1080_s1 + $0x30] sm:$0xff]  ;;  %v321_v21 = vld [vmem:[%s1080_s1 + $0x28] sm:$0xff] }
  0x1b   : > { %357 = vmatpush.msra.mxu0 %v328_v6  ;;  %v338_v20 = vld [vmem:[%s1080_s1 + $0xb0] sm:$0xff]  ;;  %v337_v22 = vld [vmem:[%s1080_s1 + $0xa8] sm:$0xff]  ;;  %v320_v23 = vld [vmem:[%s1080_s1 + $0x20] sm:$0xff]  ;;  %p729_p13 = pnand %p728_p12, %p867_p4  ;;  %p734_p3 = por %p733_p2, %p732_p1 }
  0x1c   : > { %377 = vmatpush.msra.mxu1 %v344_v7  ;;  %v336_v24 = vld [vmem:[%s1080_s1 + $0xa0] sm:$0xff]  ;;  %v319_v25 = vld [vmem:[%s1080_s1 + $0x18] sm:$0xff]  ;;  %v318_v27 = vld [vmem:[%s1080_s1 + $0x10] sm:$0xff] }
  0x1d   : > { %358 = vmatpush.msra.mxu0 %v327_v8  ;;  %v335_v26 = vld [vmem:[%s1080_s1 + $0x98] sm:$0xff]  ;;  %v334_v28 = vld [vmem:[%s1080_s1 + $0x90] sm:$0xff]  ;;  %v317_v29 = vld [vmem:[%s1080_s1 + $0x8] sm:$0xff]  ;;  %p730_p0 = pneg %p729_p13 }
  0x1e   : > { %378 = vmatpush.msra.mxu1 %v343_v9  ;;  %v333_v30 = vld [vmem:[%s1080_s1 + $0x88] sm:$0xff]  ;;  %v316_v31 = vld [vmem:[%s1080_s1] sm:$0xff]  ;;  %v446_v36 = vld [vmem:[%s1084_s5 + $0x70] sm:$0xff] }
  0x1f   : > { %359 = vmatpush.msra.mxu0 %v326_v10  ;;  %v332_v32 = vld [vmem:[%s1080_s1 + $0x80] sm:$0xff]  ;;  %460 = vmatpush.msra.mxu3 %v446_v36  ;;  %v442_v39 = vld [vmem:[%s1084_s5 + $0x50] sm:$0xff]  ;;  %v447_v46 = vld [vmem:[%s1084_s5 + $0x78] sm:$0xff]  ;;  %p735_p5 = pnand %p734_p3, %p730_p0 }
  0x20   : > { %379 = vmatpush.msra.mxu1 %v342_v11  ;;  %v350_v33 = vld.sshfl [vmem:[#allocation1] sm:$0xff pattern:$0x75316420]  ;;  %v351_v34 = vld.sshfl [vmem:[#allocation1 + $0x8] sm:$0xff pattern:$0x75316420] }
  0x21   : > { %360 = vmatpush.msra.mxu0 %v325_v12  ;;  %v395_v35 = vld [vmem:[%s1082_s3] sm:$0xf]  ;;  %v438_v41 = vld [vmem:[%s1084_s5 + $0x30] sm:$0xff]  ;;  %v445_v47 = vld [vmem:[%s1084_s5 + $0x68] sm:$0xff] }
  0x22   : > { %380 = vmatpush.msra.mxu1 %v341_v13  ;;  %v444_v38 = vld [vmem:[%s1084_s5 + $0x60] sm:$0xff]  ;;  %398 = vperm.xlu0 %710, %v395_v35   ;;  %v443_v48 = vld [vmem:[%s1084_s5 + $0x58] sm:$0xff]  ;;  %v441_v49 = vld [vmem:[%s1084_s5 + $0x48] sm:$0xff] }
  0x23   : > { %361 = vmatpush.msra.mxu0 %v324_v15  ;;  %461 = vmatpush.msra.mxu3 %v444_v38  ;;  %v440_v40 = vld [vmem:[%s1084_s5 + $0x40] sm:$0xff]  ;;  %v439_v50 = vld [vmem:[%s1084_s5 + $0x38] sm:$0xff]  ;;  %v437_v52 = vld [vmem:[%s1084_s5 + $0x28] sm:$0xff] }
  0x24   : > { %381 = vmatpush.msra.mxu1 %v340_v16  ;;  %v394_v45 = vld [vmem:[%s1081_s2] sm:$0xf]  ;;  %v434_v53 = vld [vmem:[%s1084_s5 + $0x10] sm:$0xff]  ;;  %v435_v54 = vld [vmem:[%s1084_s5 + $0x18] sm:$0xff] }
  0x25   : > { %362 = vmatpush.msra.mxu0 %v323_v17  ;;  %462 = vmatpush.msra.mxu3 %v442_v39  ;;  %v436_v51 = vld [vmem:[%s1084_s5 + $0x20] sm:$0xff]  ;;  %v433_v56 = vld [vmem:[%s1084_s5 + $0x8] sm:$0xff] }
  0x26   : > { %382 = vmatpush.msra.mxu1 %v339_v18  ;;  %v432_v55 = vld [vmem:[%s1084_s5] sm:$0xff] }
  0x27   : > { %363 = vmatpush.msra.mxu0 %v322_v19  ;;  %463 = vmatpush.msra.mxu3 %v440_v40  ;;  %v430_v60 = vld [vmem:[%s1083_s4] sm:$0xf] }
  0x28   : > { %383 = vmatpush.msra.mxu1 %v338_v20 }
  0x29   : > { %364 = vmatpush.msra.mxu0 %v321_v21  ;;  %464 = vmatpush.msra.mxu3 %v438_v41 }
  0x2a   : > { %384 = vmatpush.msra.mxu1 %v337_v22 }
  0x2b   : > { %365 = vmatpush.msra.mxu0 %v320_v23  ;;  %465 = vmatpush.msra.mxu3 %v436_v51 }
  0x2c   : > { %385 = vmatpush.msra.mxu1 %v336_v24 }
  0x2d   : > { %366 = vmatpush.msra.mxu0 %v319_v25  ;;  %466 = vmatpush.msra.mxu3 %v434_v53 }
  0x2e   : > { %386 = vmatpush.msra.mxu1 %v335_v26 }
  0x2f   : > { %367 = vmatpush.msra.mxu0 %v318_v27  ;;  %467 = vmatpush.msra.mxu3 %v432_v55 }
  0x30   : > { %387 = vmatpush.msra.mxu1 %v334_v28 }
  0x31   : > { %368 = vmatpush.msra.mxu0 %v317_v29 }
  0x32   : > { %388 = vmatpush.msra.mxu1 %v333_v30 }
  0x33   : > { %369 = vmatpush.msra.mxu0 %v316_v31 }
  0x34   : > { %389 = vmatpush.msra.mxu1 %v332_v32  ;;  %370 = vmatmul.f32.vlgmr.msra.gmra.mxu0 %v350_v33 }
  0x35   : > { %390 = vmatmul.f32.vlgmr.msra.gmra.mxu1 %v351_v34 }
  0x94   : > { %v399_v57 = vpop.permute.xlu0 %398 }
  0xb1   : > { %v371_v42 = vpop.f32.mrf.mxu0 }
  0xb2   : > { %v391_v43 = vpop.f32.mrf.mxu1 }
  0xb3   : > { %v392_v44 = vadd.f32 %v391_v43, %v371_v42 }
  0xb5   : > { %643 = vmatpush.msk.msra.mxu2 %vm405_vm0, %v392_v44 }
  0xb6   : > { %644 = vmatmul.msk.f32.vlgmr.msra.gmra.mxu2 %vm401_vm1, %v394_v45 }
  0xb7   : > { %480 = vmatpush.msrb.mxu2 %v447_v46 }
  0xb9   : > { %481 = vmatpush.msrb.mxu2 %v445_v47 }
  0xbb   : > { %482 = vmatpush.msrb.mxu2 %v443_v48 }
  0xbd   : > { %483 = vmatpush.msrb.mxu2 %v441_v49 }
  0xbf   : > { %484 = vmatpush.msrb.mxu2 %v439_v50 }
  0xc1   : > { %485 = vmatpush.msrb.mxu2 %v437_v52 }
  0xc3   : > { %486 = vmatpush.msrb.mxu2 %v435_v54 }
  0xc5   : > { %487 = vmatpush.msrb.mxu2 %v433_v56 }
 0x139   : > { %v426_v58 = vpop.f32.mrf.mxu2 }
 0x13a   : > { %v427_v59 = vadd.f32 %v426_v58, %v399_v57 }
 0x13c   : > { %v429_v61 = vmax.f32 %v427_v59, 0.0 }
 0x13e   : > { %v431_v62 = vmul.f32 %v430_v60, %v429_v61 }
 0x140   : > { %645 = vmatmul.msk.f32.vlgmr.msra.gmra.mxu3 %vm448_vm2, %v431_v62  ;;  %646 = vmatmul.msk.f32.vlgmr.msrb.gmra.mxu2 %vm448_vm2, %v431_v62 }
 0x1c3   : > { %v489_v63 = vpop.f32.mrf.mxu2  ;;  %v469_v1 = vpop.f32.mrf.mxu3 }
 0x1c4   : > { %v494_v0 = vrot.slane %v489_v63, 4 }
 0x1c6   : > { %v495_v2 = vsel %vm405_vm0, %v469_v1, %v494_v0 }
 0x1c7   : > { %497 = vst [vmem:[%s297_s12] sm:$0xff] %v495_v2 }
 0x1c8   : > { %738 = shalt.err (!%p735_p5)
}
 0x1c9   : > { %654 = dma.vmem_to_hbm [thread:$0]  (%p867_p4), %s515_s13, 128, %s517_s15, %s499_s16  }
 0x1ca PF: > { %p660_p6 = scmp.ge.s32.totalorder %s789_s26, 2  ;;  %s528_s20 = sand.u32 1, %s769_s21  }
 0x1cb   : > { %s529_s30 = scalar_lea.sflag [#allocation3], %s528_s20 }
 0x1cc   : > { %p657_p7 = pnand %p660_p6, %p874_p8 }
 0x1ce   : > { %p658_p9 = pneg %p657_p7 }
 0x1d0   : > { %764 = dma.done.wait (%p658_p9), %s529_s30, 128  }
 0x1d1   : > { %766 = vsyncadd (%p658_p9), %s529_s30, 4294967168  ;;  %s19_s26 = sadd.s32 1, %s789_s26   ;;  %s1088_s21 = smov %s773_s22 }
 0x1d2   : > { %p16_p10 = scmp.ge.s32.totalorder %s19_s26, 4   ;;  %s1089_s22 = smov %s777_s23 }
 0x1d3   : > { %s1090_s23 = smov %s880_s10  ;;  %s1091_s24 = smov %s785_s25 }
 0x1d4   : > { %s1092_s25 = smov %s1094_s29  ;;  %18 = sbr.rel (!%p16_p10) target bundleno = 4 (0x4), region = 88 }
 0x1d9   :  { %535 = vsyncpa [#allocation3], 1 }
 0x1da   :  { %537 = vsyncpa [#allocation3 + $0x1], 1 }

</bundles_post_ra>
